<compile_context>
chip_gen: v7x
topology: tpu7x:2x2x1
jax: 0.10.0
libtpu: 0.0.40
codegen_flags: <defaults>
</compile_context>

<pallas_src>
import jax
import jax.numpy as jnp
from jax.experimental import pallas as pl
from jax.experimental.pallas import tpu as pltpu


def _round_up(x: int, m: int) -> int:
    return (x + m - 1) // m * m


# ----------------------------- Pallas kernel -------------------------------
def _make_kernel(write_emb: bool):
    def kernel(
        x_ref,      # [TB, D]          merged [kp | bbox] stream (bf16/f32)
        w_ref,      # [D, E_pad]       fused model weight
        b_ref,      # [1, E_pad]       fused model bias (f32)
        wc_ref,     # [E_pad, C_pad]   classifier weight
        bc_ref,     # [1, C_pad]       classifier bias (f32, padded lanes = -1e30)
        *out_refs,  # ([TB, E],) optional emb + [TB, C] ids
    ):
        # fused model: emb = [kp | bbox] @ W_fused + b_fused   (f32 accumulation)
        emb = (
            jnp.dot(x_ref[...], w_ref[...], preferred_element_type=jnp.float32)
            + b_ref[...]
        )

        # classifier: Linear + Softmax(dim=-1); padded lanes carry -1e30 bias
        # -> exp underflows to 0, max/sum unaffected.
        logits = (
            jnp.dot(emb.astype(wc_ref.dtype), wc_ref[...],
                    preferred_element_type=jnp.float32)
            + bc_ref[...]
        )
        m = jnp.max(logits, axis=-1, keepdims=True)
        e = jnp.exp(logits - m)
        s = jnp.sum(e, axis=-1, keepdims=True)
        inv = pl.reciprocal(s, approx=True)     # EUP slot (~free)
        inv = inv * (2.0 - s * inv)             # one Newton step -> exact normalization
        ids = e * inv

        if write_emb:
            emb_ref, ids_ref = out_refs
            n_emb = emb_ref.shape[-1]
            emb_ref[...] = emb[:, :n_emb].astype(emb_ref.dtype)
        else:
            (ids_ref,) = out_refs
        n_cls = ids_ref.shape[-1]
        ids_ref[...] = ids[:, :n_cls].astype(ids_ref.dtype)

    return kernel


# ------------------------------- wrapper ------------------------------------
def linear_pbeg_forward(
    kp, bbox, params, *,
    block_b=2048,
    dtype=jnp.bfloat16,          # streamed inputs + matmul weights
    out_dtype=jnp.float32,       # emb/ids storage dtype
    return_embeddings=True,
):
    """kp: [B, J, j_dim], bbox: [B, 4] -> (embeddings [B, E], ids [B, C])."""
    B, J, j_dim = kp.shape
    d_kp = J * j_dim
    D = d_kp + 4

    # ---- fuse the activation-free Linear chain offline (single affine map) ----
    Ws = [w.astype(jnp.float32) for w in params["model_w"]]   # each [f_in, f_out]
    bs = [b.astype(jnp.float32) for b in params["model_b"]]   # each [f_out]
    W, bias = Ws[0], bs[0]
    for Wi, bi in zip(Ws[1:], bs[1:]):
        W = W @ Wi
        bias = bias @ Wi + bi
    E = W.shape[1]

    Wc = params["wc"].astype(jnp.float32)   # [E, C]
    bc = params["bc"].astype(jnp.float32)   # [C]
    C = Wc.shape[1]

    # ---- lane-dense padding of the tiny, VMEM-resident weights ----
    E_pad = _round_up(E, 128)
    C_pad = _round_up(C, 128)
    W_p = jnp.zeros((D, E_pad), jnp.float32).at[:, :E].set(W)
    b_p = jnp.zeros((1, E_pad), jnp.float32).at[0, :E].set(bias)          # stays f32
    Wc_p = jnp.zeros((E_pad, C_pad), jnp.float32).at[:E, :C].set(Wc)
    bc_p = jnp.full((1, C_pad), -1e30, jnp.float32).at[0, :C].set(bc)     # stays f32

    # ---- single merged input stream: [kp.flatten(1) | bbox] ----
    x = jnp.concatenate([kp.reshape(B, d_kp), bbox], axis=-1).astype(dtype)
    w_in = W_p.astype(dtype)
    wc_in = Wc_p.astype(dtype)

    # ---- batch blocking: ragged tail handled by block bounds (no pad copy) ----
    if B <= 64:
        TB = B                                                  # single tiny block
    else:
        TB = max(8, min(block_b, _round_up(-(-B // 4), 8)))     # aim >=4 grid steps
    grid = (pl.cdiv(B, TB),)

    stream = lambda f: pl.BlockSpec((TB, f), lambda i: (i, 0))          # streamed
    resident = lambda shape: pl.BlockSpec(shape, lambda i: (0, 0))      # stays in VMEM

    out_shapes = [jax.ShapeDtypeStruct((B, C), out_dtype)]
    out_specs = [stream(C)]
    if return_embeddings:
        out_shapes = [jax.ShapeDtypeStruct((B, E), out_dtype)] + out_shapes
        out_specs = [stream(E)] + out_specs

    in_isz = jnp.dtype(dtype).itemsize
    out_isz = jnp.dtype(out_dtype).itemsize
    bytes_out = B * C * out_isz + (B * E * out_isz if return_embeddings else 0)
    cost = pl.CostEstimate(
        flops=2 * B * D * E_pad + 2 * B * E_pad * C_pad + 5 * B * C_pad,
        transcendentals=B * (C_pad + 1),
        bytes_accessed=B * D * in_isz
        + (D * E_pad + E_pad * C_pad) * in_isz
        + (E_pad + C_pad) * 4
        + bytes_out,
    )

    outs = pl.pallas_call(
        _make_kernel(return_embeddings),
        out_shape=tuple(out_shapes),
        grid=grid,
        in_specs=[
            stream(D),
            resident((D, E_pad)),
            resident((1, E_pad)),
            resident((E_pad, C_pad)),
            resident((1, C_pad)),
        ],
        out_specs=tuple(out_specs),
        compiler_params=pltpu.CompilerParams(
            dimension_semantics=("parallel",),
            vmem_limit_bytes=32 * 1024 * 1024,   # safe on v5e/v6e/v7x, covers big tiles
        ),
        cost_estimate=cost,
    )(x, w_in, b_p, wc_in, bc_p)

    if return_embeddings:
        emb, ids = outs
        return emb, ids
    (ids,) = outs
    return ids


# --------------------------- reference (pure JAX) ----------------------------
def linear_pbeg_reference(kp, bbox, params):
    B = kp.shape[0]
    data = jnp.concatenate([kp.reshape(B, -1), bbox], axis=-1)
    h = data
    for W, b in zip(params["model_w"], params["model_b"]):
        h = h @ W + b
    emb = h
    ids = jax.nn.softmax(emb @ params["wc"] + params["bc"], axis=-1)
    return emb, ids


# --------------------------------- main --------------------------------------
if __name__ == "__main__":
    # Small configuration mirroring the module hyper-parameters.
    J, j_dim = 17, 2    # joint_shape (COCO)
    hidden = [32]       # hidden_layers -> model: Linear(38, 32), Linear(32, E)
    E = 16              # embedding_size
    C = 10              # nof_classes

    sizes = [J * j_dim + 4] + hidden + [E]
    n_layers = len(sizes) - 1

    key = jax.random.PRNGKey(0)
    keys = jax.random.split(key, 2 * n_layers + 4)

    def init(k, shape, fan_in):
        bound = 1.0 / jnp.sqrt(jnp.float32(fan_in))
        return jax.random.uniform(k, shape, jnp.float32, -bound, bound)

    model_w, model_b = [], []
    for li in range(n_layers):
        f_in, f_out = sizes[li], sizes[li + 1]
        model_w.append(init(keys[2 * li], (f_in, f_out), f_in))
        model_b.append(init(keys[2 * li + 1], (f_out,), f_in))

    params = {
        "model_w": model_w,                 # stacked nn.Linear weights, stored [in, out]
        "model_b": model_b,
        "wc": init(keys[-4], (E, C), E),    # classifier Linear(E, C)
        "bc": init(keys[-3], (C,), E),
    }

    # ---- case 1: tiny batch, exact f32 path, tight tolerances ----
    B = 2
    kp = jax.random.normal(keys[-2], (B, J, j_dim), jnp.float32)
    bbox = jax.random.uniform(keys[-1], (B, 4), jnp.float32, 0.0, 100.0)
    emb, ids = linear_pbeg_forward(kp, bbox, params, dtype=jnp.float32)
    emb = jax.block_until_ready(emb)
    ids = jax.block_until_ready(ids)
    emb_ref, ids_ref = linear_pbeg_reference(kp, bbox, params)
    assert emb.shape == (B, E) and ids.shape == (B, C)
    assert jnp.allclose(emb, emb_ref, atol=2e-3, rtol=1e-4)
    assert jnp.allclose(ids, ids_ref, atol=2e-3, rtol=1e-3)
    assert jnp.allclose(jnp.sum(ids, axis=-1), 1.0, atol=1e-3)

    # ---- case 2: multi-block grid with ragged tail + bf16 streams (default) ----
    B2 = 200
    kp2 = jax.random.normal(jax.random.PRNGKey(1), (B2, J, j_dim), jnp.float32)
    bbox2 = jax.random.uniform(jax.random.PRNGKey(2), (B2, 4), jnp.float32, 0.0, 100.0)
    emb2, ids2 = linear_pbeg_forward(kp2, bbox2, params)   # bf16 streams/weights
    emb2 = jax.block_until_ready(emb2)
    ids2 = jax.block_until_ready(ids2)
    emb2_ref, ids2_ref = linear_pbeg_reference(kp2, bbox2, params)
    assert emb2.shape == (B2, E) and ids2.shape == (B2, C)
    assert bool(jnp.all(jnp.isfinite(emb2))) and bool(jnp.all(jnp.isfinite(ids2)))
    assert jnp.allclose(jnp.sum(ids2, axis=-1), 1.0, atol=2e-2)
    assert jnp.allclose(emb2, emb2_ref, atol=2.0, rtol=5e-2)   # bf16-stream tolerance
    assert jnp.allclose(ids2, ids2_ref, atol=2e-1)

    # ---- case 3: ids-only path (emb HBM writeback skipped) ----
    ids3 = linear_pbeg_forward(kp2, bbox2, params, return_embeddings=False)
    ids3 = jax.block_until_ready(ids3)
    assert ids3.shape == (B2, C)
    assert jnp.allclose(jnp.sum(ids3, axis=-1), 1.0, atol=2e-2)

    print("KERNEL_OK")
</pallas_src>

<mosaic_0001>
module attributes {stable_mosaic.version = 11 : i64} {
  func.func @kernel(%arg0: i32, %arg1: memref<2x38xf32, #tpu.memory_space<vmem>>, %arg2: memref<38x128xf32, #tpu.memory_space<vmem>>, %arg3: memref<1x128xf32, #tpu.memory_space<vmem>>, %arg4: memref<128x128xf32, #tpu.memory_space<vmem>>, %arg5: memref<1x128xf32, #tpu.memory_space<vmem>>, %arg6: memref<2x16xf32, #tpu.memory_space<vmem>>, %arg7: memref<2x10xf32, #tpu.memory_space<vmem>>) attributes {dimension_semantics = [#tpu.dimension_semantics<parallel>], iteration_bounds = array<i64: 1>, scalar_prefetch = 0 : i64, scratch_operands = 0 : i64, tpu.core_type = #tpu.core_type<tc>, window_params = [{transform_indices = @transform_0, window_bounds = array<i64: 2, 38>}, {pipeline_mode = #tpu.pipeline_mode<synchronous>, transform_indices = @transform_1, window_bounds = array<i64: 38, 128>}, {pipeline_mode = #tpu.pipeline_mode<synchronous>, transform_indices = @transform_2, window_bounds = array<i64: 1, 128>}, {pipeline_mode = #tpu.pipeline_mode<synchronous>, transform_indices = @transform_3, window_bounds = array<i64: 128, 128>}, {pipeline_mode = #tpu.pipeline_mode<synchronous>, transform_indices = @transform_4, window_bounds = array<i64: 1, 128>}, {transform_indices = @transform_5, window_bounds = array<i64: 2, 16>}, {transform_indices = @transform_6, window_bounds = array<i64: 2, 10>}]} {
    %c0 = arith.constant 0 : index
    %c0_0 = arith.constant 0 : index
    %0 = vector.load %arg1[%c0, %c0_0] : memref<2x38xf32, #tpu.memory_space<vmem>>, vector<2x38xf32>
    %c0_1 = arith.constant 0 : index
    %c0_2 = arith.constant 0 : index
    %1 = vector.load %arg2[%c0_1, %c0_2] : memref<38x128xf32, #tpu.memory_space<vmem>>, vector<38x128xf32>
    %cst = arith.constant dense<0.000000e+00> : vector<2x128xf32>
    %2 = tpu.matmul %0, %1, %cst {dimension_numbers = #tpu.dot_dimension_numbers<[1], [0], [0], [1], [0, 0, 1, 1], [], []>} : vector<2x38xf32>, vector<38x128xf32>, vector<2x128xf32> -> vector<2x128xf32>
    %c0_3 = arith.constant 0 : index
    %c0_4 = arith.constant 0 : index
    %3 = vector.load %arg3[%c0_3, %c0_4] : memref<1x128xf32, #tpu.memory_space<vmem>>, vector<1x128xf32>
    %4 = vector.broadcast %3 : vector<1x128xf32> to vector<2x128xf32>
    %5 = arith.addf %2, %4 : vector<2x128xf32>
    %c0_5 = arith.constant 0 : index
    %c0_6 = arith.constant 0 : index
    %6 = vector.load %arg4[%c0_5, %c0_6] : memref<128x128xf32, #tpu.memory_space<vmem>>, vector<128x128xf32>
    %cst_7 = arith.constant dense<0.000000e+00> : vector<2x128xf32>
    %7 = tpu.matmul %5, %6, %cst_7 {dimension_numbers = #tpu.dot_dimension_numbers<[1], [0], [0], [1], [0, 0, 1, 1], [], []>} : vector<2x128xf32>, vector<128x128xf32>, vector<2x128xf32> -> vector<2x128xf32>
    %c0_8 = arith.constant 0 : index
    %c0_9 = arith.constant 0 : index
    %8 = vector.load %arg5[%c0_8, %c0_9] : memref<1x128xf32, #tpu.memory_space<vmem>>, vector<1x128xf32>
    %9 = vector.broadcast %8 : vector<1x128xf32> to vector<2x128xf32>
    %10 = arith.addf %7, %9 : vector<2x128xf32>
    %cst_10 = arith.constant dense<0xFF800000> : vector<2xf32>
    %11 = vector.multi_reduction <maximumf>, %10, %cst_10 [1] : vector<2x128xf32> to vector<2xf32>
    %12 = vector.shape_cast %11 : vector<2xf32> to vector<2x1xf32>
    %13 = vector.broadcast %12 : vector<2x1xf32> to vector<2x128xf32>
    %14 = arith.subf %10, %13 : vector<2x128xf32>
    %15 = math.exp %14 : vector<2x128xf32>
    %cst_11 = arith.constant dense<0.000000e+00> : vector<2xf32>
    %16 = vector.multi_reduction <add>, %15, %cst_11 [1] : vector<2x128xf32> to vector<2xf32>
    %17 = vector.shape_cast %16 : vector<2xf32> to vector<2x1xf32>
    %18 = tpu.reciprocal %17 {approx = true} : vector<2x1xf32> -> vector<2x1xf32>
    %19 = arith.mulf %17, %18 : vector<2x1xf32>
    %cst_12 = arith.constant 2.000000e+00 : f32
    %20 = vector.broadcast %cst_12 : f32 to vector<2x1xf32>
    %21 = arith.subf %20, %19 : vector<2x1xf32>
    %22 = arith.mulf %18, %21 : vector<2x1xf32>
    %23 = vector.broadcast %22 : vector<2x1xf32> to vector<2x128xf32>
    %24 = arith.mulf %15, %23 : vector<2x128xf32>
    %25 = vector.extract_strided_slice %5 {offsets = [0, 0], sizes = [2, 16], strides = [1, 1]} : vector<2x128xf32> to vector<2x16xf32>
    %c0_13 = arith.constant 0 : index
    %c0_14 = arith.constant 0 : index
    %26 = vector.load %arg6[%c0_13, %c0_14] : memref<2x16xf32, #tpu.memory_space<vmem>>, vector<2x16xf32>
    tpu.vector_store %arg6[%c0_13, %c0_14], %25 {strides = array<i32>} : memref<2x16xf32, #tpu.memory_space<vmem>>, vector<2x16xf32>,
    %27 = vector.extract_strided_slice %24 {offsets = [0, 0], sizes = [2, 10], strides = [1, 1]} : vector<2x128xf32> to vector<2x10xf32>
    %c0_15 = arith.constant 0 : index
    %c0_16 = arith.constant 0 : index
    %28 = vector.load %arg7[%c0_15, %c0_16] : memref<2x10xf32, #tpu.memory_space<vmem>>, vector<2x10xf32>
    tpu.vector_store %arg7[%c0_15, %c0_16], %27 {strides = array<i32>} : memref<2x10xf32, #tpu.memory_space<vmem>>, vector<2x10xf32>,
    return
  }
  func.func @transform_0(%arg0: i32) -> (i32, i32) {
    %c0_i32 = arith.constant 0 : i32
    %c0_i32_0 = arith.constant 0 : i32
    return %arg0, %c0_i32 : i32, i32
  }
  func.func @transform_1(%arg0: i32) -> (i32, i32) {
    %c0_i32 = arith.constant 0 : i32
    %c0_i32_0 = arith.constant 0 : i32
    %c0_i32_1 = arith.constant 0 : i32
    return %c0_i32, %c0_i32_0 : i32, i32
  }
  func.func @transform_2(%arg0: i32) -> (i32, i32) {
    %c0_i32 = arith.constant 0 : i32
    %c0_i32_0 = arith.constant 0 : i32
    %c0_i32_1 = arith.constant 0 : i32
    return %c0_i32, %c0_i32_0 : i32, i32
  }
  func.func @transform_3(%arg0: i32) -> (i32, i32) {
    %c0_i32 = arith.constant 0 : i32
    %c0_i32_0 = arith.constant 0 : i32
    %c0_i32_1 = arith.constant 0 : i32
    return %c0_i32, %c0_i32_0 : i32, i32
  }
  func.func @transform_4(%arg0: i32) -> (i32, i32) {
    %c0_i32 = arith.constant 0 : i32
    %c0_i32_0 = arith.constant 0 : i32
    %c0_i32_1 = arith.constant 0 : i32
    return %c0_i32, %c0_i32_0 : i32, i32
  }
  func.func @transform_5(%arg0: i32) -> (i32, i32) {
    %c0_i32 = arith.constant 0 : i32
    %c0_i32_0 = arith.constant 0 : i32
    return %arg0, %c0_i32 : i32, i32
  }
  func.func @transform_6(%arg0: i32) -> (i32, i32) {
    %c0_i32 = arith.constant 0 : i32
    %c0_i32_0 = arith.constant 0 : i32
    return %arg0, %c0_i32 : i32, i32
  }
}

</mosaic_0001>

<bundles_post_ra>
// kernel: tpu_custom_call.1
= control target key start
LH: loop header
LB: loop body
LE: loop exit
PB: predicated region body
PF: predicated region fallthrough
CT: control target
= control target key end

     0   :  { %12 = vsyncpa [#allocation3], 0  ;;  %s650_s0 = inlined_call_operand.hbm [shape: f32[2,38], index: 0, kind: input, shape index: {}]   ;;  %s651_s1 = inlined_call_operand.hbm [shape: f32[38,128], index: 1, kind: input, shape index: {}]   ;;  %s652_s2 = inlined_call_operand.vmem [shape: f32[1,128], index: 2, kind: input, shape index: {}]   ;;  %s653_s3 = inlined_call_operand.hbm [shape: f32[128,128], index: 3, kind: input, shape index: {}]   ;;  %s654_s4 = inlined_call_operand.vmem [shape: f32[1,128], index: 4, kind: input, shape index: {}]   ;;  %s655_s5 = inlined_call_operand.hbm [shape: f32[2,16], index: 5, kind: output, shape index: {0}]   ;;  %s656_s6 = inlined_call_operand.hbm [shape: f32[2,10], index: 6, kind: output, shape index: {1}]  }
   0x1   :  { %13 = vsyncpa [#allocation6], 0 }
   0x2   :  { %14 = vsyncpa [#allocation4], 0 }
   0x3   :  { %15 = vsyncpa [#allocation10], 0  ;;  %s533_s21 = smov [#allocation5]   ;;  %s415_s25 = scalar_lea.hbm %s651_s1, 640 }
   0x4   :  { %s31_s22 = sshll.u32 %s533_s21, 4  ;;  %p416_p0 = scmp.ne.s32.totalorder %s651_s1, %s415_s25  ;;  %s32_s22 = int_to_ptr.vmem [resolvable:$true] %s31_s22 }
   0x5   :  { %p419_p1 = scmp.lt.u32.totalorder %s415_s25, %s651_s1 }
   0x7   :  { %p421_p2 = pnand %p419_p1, %p416_p0 }
   0x9   :  { %424 = shalt.err (!%p421_p2)
}
   0xa   :  { %s425_s30 = scalar_lea.vmem %s32_s22, 640  ;;  %p430_p4 = scmp.lt.s32.totalorder %s32_s22, %s32_s22 }
   0xb   :  { %p426_p3 = scmp.ne.s32.totalorder %s32_s22, %s425_s30  ;;  %p431_p5 = scmp.lt.s32.totalorder %s425_s30, %s425_s30 }
   0xd   :  { %p432_p6 = por %p431_p5, %p430_p4 }
   0xf   :  { %p433_p7 = pnand %p432_p6, %p426_p3 }
  0x11   :  { %436 = shalt.err (!%p433_p7)
}
  0x12   :  { %s534_s7 = smov 128   ;;  %s535_s8 = smov 8  }
  0x13   :  { %37 = dma.hbm_to_vmem [thread:$0]  %s651_s1, 640, %s32_s22, [#allocation6], %s534_s7, %s534_s7, %s535_s8  }
  0x14   :  { %s536_s11 = smov [#allocation2]   ;;  %s537_s13 = smov [#allocation7]  }
  0x15   :  { %s22_s12 = sshll.u32 %s536_s11, 4  ;;  %s45_s14 = sshll.u32 %s537_s13, 4  ;;  %s23_s12 = int_to_ptr.vmem [resolvable:$true] %s22_s12  ;;  %s46_s14 = int_to_ptr.vmem [resolvable:$true] %s45_s14 }
  0x16   :  { %s437_s17 = scalar_lea.hbm %s650_s0, 32 }
  0x17   :  { %p438_p8 = scmp.ne.s32.totalorder %s650_s0, %s437_s17  ;;  %p441_p9 = scmp.lt.u32.totalorder %s437_s17, %s650_s0 }
  0x19   :  { %p443_p10 = pnand %p441_p9, %p438_p8 }
  0x1b   :  { %446 = shalt.err (!%p443_p10)
}
  0x1c   :  { %s447_s1 = scalar_lea.vmem %s23_s12, 32  ;;  %p452_p12 = scmp.lt.s32.totalorder %s23_s12, %s23_s12 }
  0x1d   :  { %p448_p11 = scmp.ne.s32.totalorder %s23_s12, %s447_s1  ;;  %p453_p13 = scmp.lt.s32.totalorder %s447_s1, %s447_s1 }
  0x1f   :  { %p454_p0 = por %p453_p13, %p452_p12 }
  0x21   :  { %p455_p1 = pnand %p454_p0, %p448_p11 }
  0x23   :  { %458 = shalt.err (!%p455_p1)
}
  0x24   :  { %25 = dma.hbm_to_vmem [thread:$0]  %s650_s0, 32, %s23_s12, [#allocation3]  }
  0x25   :  { %s459_s26 = scalar_lea.hbm %s653_s3, 2048 }
  0x26   :  { %p460_p2 = scmp.ne.s32.totalorder %s653_s3, %s459_s26  ;;  %p463_p3 = scmp.lt.u32.totalorder %s459_s26, %s653_s3 }
  0x28   :  { %p465_p4 = pnand %p463_p3, %p460_p2 }
  0x2a   :  { %468 = shalt.err (!%p465_p4)
}
  0x2b   :  { %s469_s9 = scalar_lea.vmem %s46_s14, 2048  ;;  %p474_p6 = scmp.lt.s32.totalorder %s46_s14, %s46_s14 }
  0x2c   :  { %p470_p5 = scmp.ne.s32.totalorder %s46_s14, %s469_s9  ;;  %p475_p7 = scmp.lt.s32.totalorder %s469_s9, %s469_s9 }
  0x2e   :  { %p476_p8 = por %p475_p7, %p474_p6 }
  0x30   :  { %p477_p9 = pnand %p476_p8, %p470_p5 }
  0x32   :  { %480 = shalt.err (!%p477_p9)
}
  0x33   :  { %51 = dma.hbm_to_vmem [thread:$0]  %s653_s3, 2048, %s46_s14, [#allocation6], %s534_s7, %s534_s7, %s535_s8  }
  0x34   :  { %525 = dma.done.wait [#allocation3], 32  }
  0x35   :  { %526 = vsyncadd [#allocation3], 4294967264 }
  0x36   :  { %527 = dma.done.wait [#allocation6], 2688  }
  0x37   :  { %528 = vsyncadd [#allocation6], 4294964608  ;;  %v538_v0 = vmov 0.0|0.0   ;;  %vm539_vm0 = vmmov 0   ;;  %v540_v1 = vmov 0.0   ;;  %v64_v2 = vld [vmem:[#allocation5] sm:$0xff] }
  0x38   :  { %371 = vmatprep.subr.bf16.mxu0 %v538_v0  ;;  %333 = vmatprep.mubr.msk.f32.mxu0 %vm539_vm0, %v540_v1  ;;  %v65_v3 = vld [vmem:[#allocation5 + $0x8] sm:$0xff]  ;;  %v66_v4 = vld [vmem:[#allocation5 + $0x10] sm:$0xff]  ;;  %v67_v6 = vld [vmem:[#allocation5 + $0x18] sm:$0xff]  ;;  %vm80_vm1 = vcmask 1045504   ;;  %vm76_vm2 = vcmask 310272   ;;  %vm262_vm3 = vcmask 123904  }
  0x39   :  { %377 = vmatprep.subr.bf16.mxu1 %v538_v0  ;;  %368 = vmatprep.mubr.msk.f32.mxu1 %vm539_vm0, %v540_v1  ;;  %v372_v5 = vpack.c.bf16 %v65_v3, %v64_v2  ;;  %v154_v7 = vld [vmem:[#allocation7] sm:$0xff]  ;;  %v155_v8 = vld [vmem:[#allocation7 + $0x8] sm:$0xff]  ;;  %v156_v9 = vld [vmem:[#allocation7 + $0x10] sm:$0xff]  ;;  %v375_v10 = vpack.c.bf16 %v67_v6, %v66_v4  ;;  %vm247_vm4 = vcmask 1041408  }
  0x3a   :  { %v378_v11 = vpack.c.bf16 %v155_v8, %v154_v7  ;;  %v157_v12 = vld [vmem:[#allocation7 + $0x18] sm:$0xff]  ;;  %v158_v14 = vld [vmem:[#allocation7 + $0x20] sm:$0xff]  ;;  %v159_v15 = vld [vmem:[#allocation7 + $0x28] sm:$0xff] }
  0x3b   :  { %373 = vmatpush3.bf16.msra.mxu0 %v372_v5  ;;  %v381_v13 = vpack.c.bf16 %v157_v12, %v156_v9  ;;  %v68_v16 = vld [vmem:[#allocation5 + $0x20] sm:$0x3f]  ;;  %v63_v17 = vld [vmem:[#allocation2] sm:$0x3]  ;;  %v384_v18 = vpack.c.bf16 %v159_v15, %v158_v14  ;;  %v162_v22 = vld [vmem:[#allocation7 + $0x40] sm:$0xff] }
  0x3c   :  { %374 = vmatprep.subr.bf16.mxu0 %v538_v0  ;;  %379 = vmatpush3.bf16.msra.mxu1 %v378_v11  ;;  %v160_v19 = vld [vmem:[#allocation7 + $0x30] sm:$0xff]  ;;  %v161_v20 = vld [vmem:[#allocation7 + $0x38] sm:$0xff]  ;;  %v163_v23 = vld [vmem:[#allocation7 + $0x48] sm:$0xff] }
  0x3d   :  { %380 = vmatprep.subr.bf16.mxu1 %v538_v0  ;;  %v387_v21 = vpack.c.bf16 %v161_v20, %v160_v19  ;;  %v390_v24 = vpack.c.bf16 %v163_v23, %v162_v22  ;;  %v164_v25 = vld [vmem:[#allocation7 + $0x50] sm:$0xff]  ;;  %v165_v26 = vld [vmem:[#allocation7 + $0x58] sm:$0xff]  ;;  %v166_v28 = vld [vmem:[#allocation7 + $0x60] sm:$0xff] }
  0x3e   :  { %v393_v27 = vpack.c.bf16 %v165_v26, %v164_v25  ;;  %v167_v29 = vld [vmem:[#allocation7 + $0x68] sm:$0xff]  ;;  %v168_v31 = vld [vmem:[#allocation7 + $0x70] sm:$0xff]  ;;  %v169_v32 = vld [vmem:[#allocation7 + $0x78] sm:$0xff] }
  0x3f   :  { %376 = vmatpush3.bf16.msra.mxu0 %v375_v10  ;;  %v396_v30 = vpack.c.bf16 %v167_v29, %v166_v28  ;;  %v399_v33 = vpack.c.bf16 %v169_v32, %v168_v31  ;;  %v296_v34 = vld [vmem:[%s652_s2] ss:$0 sm:$0xff]  ;;  %s541_s2 = smov [#allocation8]  }
  0x40   :  { %331 = vmatprep.subr.mxu0 %v540_v1  ;;  %382 = vmatpush3.bf16.msra.mxu1 %v381_v13  ;;  %v299_v38 = vld [vmem:[%s654_s4] ss:$0 sm:$0xff]  ;;  %s272_s12 = sshll.u32 %s541_s2, 4  ;;  %s273_s12 = int_to_ptr.vmem [resolvable:$true] %s272_s12 }
  0x41   :  { %383 = vmatprep.subr.bf16.mxu1 %v538_v0  ;;  %s481_s13 = scalar_lea.vmem %s273_s12, 32  ;;  %p486_p11 = scmp.lt.s32.totalorder %s273_s12, %s273_s12 }
  0x42   :  { %p482_p10 = scmp.ne.s32.totalorder %s273_s12, %s481_s13  ;;  %p487_p12 = scmp.lt.s32.totalorder %s481_s13, %s481_s13 }
  0x43   :  { %332 = vmatpush3.msk.msra.mxu0 %vm80_vm1, %v68_v16 }
  0x44   :  { %334 = vmatmul.mubr.msk.f32.vlgmr.msra.gmra.mrb[0].mxu0 %vm76_vm2, %v63_v17  ;;  %385 = vmatpush3.bf16.msra.mxu1 %v384_v18  ;;  %p488_p13 = por %p487_p12, %p486_p11 }
  0x45   :  { %386 = vmatprep.subr.bf16.mxu1 %v538_v0 }
  0x46   :  { %p489_p0 = pnand %p488_p13, %p482_p10 }
  0x48   :  { %388 = vmatpush3.bf16.msra.mxu1 %v387_v21 }
  0x49   :  { %389 = vmatprep.subr.bf16.mxu1 %v538_v0 }
  0x4c   :  { %391 = vmatpush3.bf16.msra.mxu1 %v390_v24 }
  0x4d   :  { %392 = vmatprep.subr.bf16.mxu1 %v538_v0 }
  0x50   :  { %394 = vmatpush3.bf16.msra.mxu1 %v393_v27 }
  0x51   :  { %395 = vmatprep.subr.bf16.mxu1 %v538_v0 }
  0x54   :  { %397 = vmatpush3.bf16.msra.mxu1 %v396_v30 }
  0x55   :  { %398 = vmatprep.subr.bf16.mxu1 %v538_v0 }
  0x58   :  { %400 = vmatpush3.bf16.msra.mxu1 %v399_v33 }
 0x117   :  { %v150_v35 = vpop.f32.mrb[0].mxu0 }
 0x118   :  { %v151_v36 = vadd.f32 %v296_v34, %v150_v35  ;;  %v335_v37 = vpop.f32.mrb[1].mxu0 }
 0x11a   :  { %369 = vmatmul.mubr.f32.vlgmr.msra.gmra.mrb[0].mxu1 %v151_v36  ;;  %263 = vst.msk [vmem:[#allocation8] sm:$0x3] %vm262_vm3, %v151_v36 }
 0x1ed   :  { %v243_v39 = vpop.f32.mrb[0].mxu1 }
 0x1ee   :  { %v244_v40 = vadd.f32 %v299_v38, %v243_v39  ;;  %v370_v41 = vpop.f32.mrb[1].mxu1 }
 0x1f0   :  { %v248_v42 = vsel %vm247_vm4, %v244_v40, -inf }
 0x1f1   :  { %249 = vmax.xlane.f32.xlu0 %v248_v42 }
 0x27e   :  { %v250_v43 = vpop.xlane.xlu0 %249 }
 0x27f   :  { %v251_v44 = vsub.f32 %v244_v40, %v250_v43 }
 0x281   :  { %v252_v45 = vmul.f32 1.442695, %v251_v44 }
 0x283   :  { %411 = vpow2.f32 %v252_v45 }
 0x28d   :  { %v412_v46 = vpop.eup %411 }
 0x28e   :  { %v254_v47 = vsel %vm247_vm4, %v412_v46, 0.0 }
 0x28f   :  { %255 = vadd.xlane.f32.xlu0 %v254_v47 }
 0x290   :  { %492 = shalt.err (!%p489_p0)
}
 0x291   :  { %s493_s15 = scalar_lea.hbm %s655_s5, 32 }
 0x292   :  { %p494_p1 = scmp.ne.s32.totalorder %s655_s5, %s493_s15  ;;  %p497_p2 = scmp.lt.u32.totalorder %s493_s15, %s655_s5 }
 0x294   :  { %p499_p3 = pnand %p497_p2, %p494_p1 }
 0x296   :  { %502 = shalt.err (!%p499_p3)
}
 0x297   :  { %275 = dma.vmem_to_hbm [thread:$0]  %s273_s12, 32, %s655_s5, [#allocation4]   ;;  %vm264_vm5 = vcmask 74752  }
 0x298   :  { %s542_s1 = smov [#allocation9]  }
 0x299   :  { %s282_s22 = sshll.u32 %s542_s1, 4  ;;  %s283_s22 = int_to_ptr.vmem [resolvable:$true] %s282_s22 }
 0x29a   :  { %s503_s23 = scalar_lea.vmem %s283_s22, 32  ;;  %p508_p5 = scmp.lt.s32.totalorder %s283_s22, %s283_s22 }
 0x29b   :  { %p504_p4 = scmp.ne.s32.totalorder %s283_s22, %s503_s23  ;;  %p509_p6 = scmp.lt.s32.totalorder %s503_s23, %s503_s23 }
 0x29d   :  { %p510_p7 = por %p509_p6, %p508_p5 }
 0x29f   :  { %p511_p8 = pnand %p510_p7, %p504_p4 }
 0x31c   :  { %v256_v48 = vpop.xlane.xlu0 %255 }
 0x31d   :  { %413 = vrcp.f32 %v256_v48 }
 0x327   :  { %v414_v49 = vpop.eup %413 }
 0x328   :  { %v258_v50 = vmul.f32 %v414_v49, %v256_v48 }
 0x32a   :  { %v259_v51 = vsub.f32 2.0, %v258_v50 }
 0x32c   :  { %v260_v52 = vmul.f32 %v414_v49, %v259_v51 }
 0x32e   :  { %v261_v53 = vmul.f32 %v412_v46, %v260_v52 }
 0x330   :  { %265 = vst.msk [vmem:[#allocation9] sm:$0x3] %vm264_vm5, %v261_v53 }
 0x331   :  { %514 = shalt.err (!%p511_p8)
}
 0x332   :  { %s515_s25 = scalar_lea.hbm %s656_s6, 32 }
 0x333   :  { %p516_p9 = scmp.ne.s32.totalorder %s656_s6, %s515_s25  ;;  %p519_p10 = scmp.lt.u32.totalorder %s515_s25, %s656_s6 }
 0x335   :  { %p521_p11 = pnand %p519_p10, %p516_p9 }
 0x337   :  { %524 = shalt.err (!%p521_p11)
}
 0x338   :  { %285 = dma.vmem_to_hbm [thread:$0]  %s283_s22, 32, %s656_s6, [#allocation10]  }
 0x339   :  { %529 = dma.done.wait [#allocation4], 32  }
 0x33a   :  { %530 = vsyncadd [#allocation4], 4294967264 }
 0x33b   :  { %531 = dma.done.wait [#allocation10], 32  }
 0x33c   :  { %532 = vsyncadd [#allocation10], 4294967264 }
 0x33d   :  { %292 = vsyncpa [#allocation3], 1 }
 0x33e   :  { %293 = vsyncpa [#allocation6], 1 }
 0x33f   :  { %294 = vsyncpa [#allocation4], 1 }
 0x340   :  { %295 = vsyncpa [#allocation10], 1 }

</bundles_post_ra>
